<compile_context>
chip_gen: v7x
topology: tpu7x:2x2x1
jax: 0.10.0
libtpu: 0.0.40
codegen_flags: <defaults>
</compile_context>

<pallas_src>
import functools
import math

import jax
import jax.numpy as jnp
from jax import lax
from jax.experimental import pallas as pl
from jax.experimental.pallas import tpu as pltpu


def _gemv_kernel(x_ref, w_ref, b_ref, o_ref, *, scale):
    # x_ref: (TM, d) VMEM   w_ref: (1, d) VMEM   b_ref: (1,) SMEM   o_ref: (1, TM)
    # Contract the d axis of w with the d axis of x on the MXU -> (1, TM),
    # accumulated in f32.  Scale + bias are applied to the tiny (1, TM) result
    # on the VPU (free under the HBM-bound roofline).
    y = lax.dot_general(
        w_ref[...],
        x_ref[...],
        dimension_numbers=(((1,), (1,)), ((), ())),
        preferred_element_type=jnp.float32,
    )
    o_ref[...] = (y * scale + b_ref[0]).astype(o_ref.dtype)


def _round_up(x, m):
    return ((x + m - 1) // m) * m


def _choose_tm(n, d, itemsize):
    # Keep one x tile <= ~4 MiB so the double-buffered stream (~8 MiB) fits
    # inside v5e's 16 MiB scoped-VMEM default and v7x's 64 MiB VMEM, while
    # staying in the >=512-row sweet spot whenever d allows it.  Round to a
    # multiple of 128 when possible so the lane-dense output uses unmasked
    # stores; otherwise a multiple of 8 (f32 sublane tiling).
    budget = 4 << 20
    tm = max(8, min(1024, (budget // max(1, d * itemsize)) // 8 * 8))
    tm = min(tm, _round_up(n, 8))
    tm = max(8, (tm // 8) * 8)
    if tm >= 128:
        tm = (tm // 128) * 128
    return tm


def linear_model_forward(x, w, bias=None, *, force_pallas=False, tm=None):
    """Pallas equivalent of linear_model.forward.

    x: (N, d) float32
    w: (1, d) float32 (torch Linear weight layout)
    bias: optional (1,) float32
    returns: (N,) float32  ==  (x / sqrt(d)) @ w.T  (+ bias), flattened
    """
    n, d = x.shape
    scale = 1.0 / math.sqrt(float(d))

    # Tiny problems: pallas_call launch + per-step overhead dwarfs the math;
    # XLA's fused dot is strictly faster there.  Keep the kernel for the
    # large-N streaming regime it is good at.
    if not force_pallas and n * d * x.dtype.itemsize < (256 << 10):
        y = jnp.dot(x, w.T, preferred_element_type=jnp.float32).reshape(-1) * scale
        y = y.astype(x.dtype)
        if bias is not None:
            y = y + bias[0]
        return y

    if tm is None:
        tm = _choose_tm(n, d, x.dtype.itemsize)
    assert tm % 8 == 0, "TM must be a multiple of 8 (f32 sublane tiling)"

    num_tiles = (n + tm - 1) // tm

    # Scalar bias (zero when absent) rides in SMEM so the bias add is fused
    # into the kernel epilogue instead of a second XLA pass over the output.
    b = (bias if bias is not None else jnp.zeros((1,), jnp.float32)).astype(jnp.float32)

    out = pl.pallas_call(
        functools.partial(_gemv_kernel, scale=scale),
        out_shape=jax.ShapeDtypeStruct((num_tiles, tm), x.dtype),
        grid=(num_tiles,),
        in_specs=[
            # x row tiles: streamed + double-buffered; last (partial) block is
            # clamped by the DMA, garbage rows only feed discarded outputs.
            pl.BlockSpec((tm, d), lambda i: (i, 0)),
            # w: constant block index -> fetched once, VMEM-resident.
            pl.BlockSpec((1, d), lambda i: (0, 0)),
            # bias: whole (1,) array in SMEM (scalar path).
            pl.BlockSpec(memory_space=pltpu.MemorySpace.SMEM),
        ],
        # Lane-dense output: TM on lanes -> unmasked vst + dense output DMA.
        out_specs=pl.BlockSpec((1, tm), lambda i: (i, 0)),
        compiler_params=pltpu.CompilerParams(
            # Row tiles are independent: shard across both TCs on v7x; no-op
            # on single-core v5e/v6e.
            dimension_semantics=("parallel",),
        ),
        cost_estimate=pl.CostEstimate(
            flops=2 * n * d,
            transcendentals=0,
            bytes_accessed=n * d * x.dtype.itemsize
            + d * w.dtype.itemsize
            + num_tiles * tm * x.dtype.itemsize,
        ),
    )(x, w, b)

    return out.reshape(-1)[:n]


if __name__ == "__main__":
    key = jax.random.PRNGKey(0)
    k_x, k_w, k_x2, k_x3 = jax.random.split(key, 4)

    # Small shape consistent with the module: batch N=8, hidden d=32.
    N, D = 8, 32
    x = jax.random.normal(k_x, (N, D), dtype=jnp.float32)
    w = jax.random.normal(k_w, (1, D), dtype=jnp.float32)  # nn.init.normal_ equivalent

    # Force the Pallas path so the kernel itself is exercised even at this tiny
    # size (the production wrapper routes tiny problems to plain XLA).
    y = linear_model_forward(x, w, force_pallas=True)
    jax.block_until_ready(y)
    y_ref = (jnp.dot(x, w.T) / math.sqrt(D)).reshape(-1)
    assert y.shape == (N,)
    assert jnp.allclose(y, y_ref, atol=1e-5, rtol=1e-5)

    # Non-multiple-of-tile N + bias + multi-tile grid (tm override) to exercise
    # partial boundary blocks, the parallel row-tile axis, and the fused bias.
    N2, D2 = 300, 128
    k_w2, k_b2 = jax.random.split(k_w)
    x2 = jax.random.normal(k_x2, (N2, D2), dtype=jnp.float32)
    w2 = jax.random.normal(k_w2, (1, D2), dtype=jnp.float32)
    b2 = jax.random.normal(k_b2, (1,), dtype=jnp.float32)
    y2 = linear_model_forward(x2, w2, b2, force_pallas=True, tm=128)
    jax.block_until_ready(y2)
    y2_ref = (jnp.dot(x2, w2.T) / math.sqrt(D2)).reshape(-1) + b2[0]
    assert y2.shape == (N2,)
    assert jnp.allclose(y2, y2_ref, atol=1e-5, rtol=1e-5)

    # Auto-chosen TM (multiple of 128) with a ragged tail, no bias.
    N3, D3 = 1000, 64
    k_w3, _ = jax.random.split(k_w2)
    x3 = jax.random.normal(k_x3, (N3, D3), dtype=jnp.float32)
    w3 = jax.random.normal(k_w3, (1, D3), dtype=jnp.float32)
    y3 = linear_model_forward(x3, w3, force_pallas=True)
    jax.block_until_ready(y3)
    y3_ref = (jnp.dot(x3, w3.T) / math.sqrt(D3)).reshape(-1)
    assert y3.shape == (N3,)
    assert jnp.allclose(y3, y3_ref, atol=1e-5, rtol=1e-5)

    print("KERNEL_OK")
</pallas_src>

<mosaic_0001>
module attributes {stable_mosaic.version = 11 : i64} {
  func.func @_gemv_kernel(%arg0: i32, %arg1: memref<8x32xf32, #tpu.memory_space<vmem>>, %arg2: memref<1x32xf32, #tpu.memory_space<vmem>>, %arg3: memref<1xf32, #tpu.memory_space<smem>>, %arg4: memref<1x8xf32, #tpu.memory_space<vmem>>) attributes {dimension_semantics = [#tpu.dimension_semantics<parallel>], iteration_bounds = array<i64: 1>, scalar_prefetch = 0 : i64, scratch_operands = 0 : i64, tpu.core_type = #tpu.core_type<tc>, window_params = [{transform_indices = @transform_0, window_bounds = array<i64: 8, 32>}, {pipeline_mode = #tpu.pipeline_mode<synchronous>, transform_indices = @transform_1, window_bounds = array<i64: 1, 32>}, {transform_indices = @transform_2, window_bounds = array<i64: 1>}, {transform_indices = @transform_3, window_bounds = array<i64: 1, 8>}]} {
    %c0 = arith.constant 0 : index
    %c0_0 = arith.constant 0 : index
    %0 = vector.load %arg2[%c0, %c0_0] : memref<1x32xf32, #tpu.memory_space<vmem>>, vector<1x32xf32>
    %c0_1 = arith.constant 0 : index
    %c0_2 = arith.constant 0 : index
    %1 = vector.load %arg1[%c0_1, %c0_2] : memref<8x32xf32, #tpu.memory_space<vmem>>, vector<8x32xf32>
    %cst = arith.constant dense<0.000000e+00> : vector<1x8xf32>
    %2 = tpu.matmul %0, %1, %cst {dimension_numbers = #tpu.dot_dimension_numbers<[1], [1], [0], [0], [0, 0, 1, 0], [], []>} : vector<1x32xf32>, vector<8x32xf32>, vector<1x8xf32> -> vector<1x8xf32>
    %cst_3 = arith.constant 0.176776692 : f32
    %3 = vector.broadcast %cst_3 : f32 to vector<1x8xf32>
    %4 = arith.mulf %2, %3 : vector<1x8xf32>
    %c0_4 = arith.constant 0 : index
    %5 = memref.load %arg3[%c0_4] : memref<1xf32, #tpu.memory_space<smem>>
    %6 = vector.broadcast %5 : f32 to vector<1x8xf32>
    %7 = arith.addf %4, %6 : vector<1x8xf32>
    %c0_5 = arith.constant 0 : index
    %c0_6 = arith.constant 0 : index
    %8 = vector.load %arg4[%c0_5, %c0_6] : memref<1x8xf32, #tpu.memory_space<vmem>>, vector<1x8xf32>
    tpu.vector_store %arg4[%c0_5, %c0_6], %7 {strides = array<i32>} : memref<1x8xf32, #tpu.memory_space<vmem>>, vector<1x8xf32>,
    return
  }
  func.func @transform_0(%arg0: i32) -> (i32, i32) {
    %c0_i32 = arith.constant 0 : i32
    %c0_i32_0 = arith.constant 0 : i32
    return %arg0, %c0_i32 : i32, i32
  }
  func.func @transform_1(%arg0: i32) -> (i32, i32) {
    %c0_i32 = arith.constant 0 : i32
    %c0_i32_0 = arith.constant 0 : i32
    %c0_i32_1 = arith.constant 0 : i32
    return %c0_i32, %c0_i32_0 : i32, i32
  }
  func.func @transform_2(%arg0: i32) -> i32 {
    %c0_i32 = arith.constant 0 : i32
    %c0_i32_0 = arith.constant 0 : i32
    return %c0_i32 : i32
  }
  func.func @transform_3(%arg0: i32) -> (i32, i32) {
    %c0_i32 = arith.constant 0 : i32
    %c0_i32_0 = arith.constant 0 : i32
    return %arg0, %c0_i32 : i32, i32
  }
}

</mosaic_0001>

<bundles_post_ra>
// kernel: tpu_custom_call.1
= control target key start
LH: loop header
LB: loop body
LE: loop exit
PB: predicated region body
PF: predicated region fallthrough
CT: control target
= control target key end

     0   :  { %9 = vsyncpa [#allocation4], 0  ;;  %s243_s0 = inlined_call_operand.hbm [shape: f32[8,32], index: 0, kind: input, shape index: {}]   ;;  %s244_s1 = inlined_call_operand.vmem [shape: f32[1,32], index: 1, kind: input, shape index: {}]   ;;  %s245_s2 = inlined_call_operand.<no memory space> [shape: f32[1], index: 2, kind: input, shape index: {}]   ;;  %s246_s3 = inlined_call_operand.hbm [shape: f32[1,8], index: 3, kind: output, shape index: {}]  }
   0x1   :  { %10 = vsyncpa [#allocation5], 0  ;;  %s189_s12 = smov [#allocation3]   ;;  %s141_s16 = scalar_lea.hbm %s243_s0, 128 }
   0x2   :  { %s17_s13 = sshll.u32 %s189_s12, 4  ;;  %p142_p0 = scmp.ne.s32.totalorder %s243_s0, %s141_s16  ;;  %s18_s13 = int_to_ptr.vmem [resolvable:$true] %s17_s13 }
   0x3   :  { %p145_p1 = scmp.lt.u32.totalorder %s141_s16, %s243_s0 }
   0x5   :  { %p147_p2 = pnand %p145_p1, %p142_p0 }
   0x7   :  { %150 = shalt.err (!%p147_p2)
}
   0x8   :  { %s151_s21 = scalar_lea.vmem %s18_s13, 128  ;;  %p156_p4 = scmp.lt.s32.totalorder %s18_s13, %s18_s13 }
   0x9   :  { %p152_p3 = scmp.ne.s32.totalorder %s18_s13, %s151_s21  ;;  %p157_p5 = scmp.lt.s32.totalorder %s151_s21, %s151_s21 }
   0xb   :  { %p158_p6 = por %p157_p5, %p156_p4 }
   0xd   :  { %p159_p7 = pnand %p158_p6, %p152_p3 }
   0xf   :  { %162 = shalt.err (!%p159_p7)
}
  0x10   :  { %20 = dma.hbm_to_vmem [thread:$0]  %s243_s0, 128, %s18_s13, [#allocation4]  }
  0x11   :  { %185 = dma.done.wait [#allocation4], 128  }
  0x12   :  { %186 = vsyncadd [#allocation4], 4294967168  ;;  %v190_v0 = vmov 0.0   ;;  %vm191_vm0 = vmmov 0   ;;  %vm30_vm1 = vcmask 261120   ;;  %v29_v1 = vld [vmem:[#allocation3] sm:$0xff]  ;;  %v109_v4 = vstv %s245_s2 }
  0x13   :  { %132 = vmatprep.subr.mxu0 %v190_v0  ;;  %134 = vmatprep.mubr.msk.f32.mxu0 %vm191_vm0, %v190_v0  ;;  %v28_v2 = vld [vmem:[%s244_s1] sm:$0x1]  ;;  %s192_s0 = smov [#allocation6]   ;;  %vm111_vm2 = vcmask 57344  }
  0x14   :  { %133 = vmatpush3.xpose.msk.msra.mxu0 %vm30_vm1, %v29_v1  ;;  %s119_s28 = sshll.u32 %s192_s0, 4  ;;  %s120_s28 = int_to_ptr.vmem [resolvable:$true] %s119_s28 }
  0x15   :  { %s163_s29 = scalar_lea.vmem %s120_s28, 16  ;;  %s167_s30 = scalar_lea.vmem %s120_s28, 32 }
  0x16   :  { %p164_p8 = scmp.ne.s32.totalorder %s120_s28, %s163_s29  ;;  %p168_p9 = scmp.lt.s32.totalorder %s120_s28, %s120_s28 }
  0x17   :  { %135 = vmatmul.mubr.msk.f32.vlgmr.msra.gmra.mrb[0].mxu0 %vm30_vm1, %v28_v2  ;;  %p169_p10 = scmp.lt.s32.totalorder %s167_s30, %s163_s29 }
  0x19   :  { %p170_p11 = por %p169_p10, %p168_p9 }
  0x1b   :  { %p171_p12 = pnand %p170_p11, %p164_p8 }
  0xea   :  { %v103_v3 = vpop.f32.mrb[0].mxu0 }
  0xeb   :  { %v107_v5 = vmul.f32 0.17677669, %v103_v3  ;;  %v136_v6 = vpop.f32.mrb[1].mxu0 }
  0xed   :  { %v110_v7 = vadd.f32 %v109_v4, %v107_v5 }
  0xef   :  { %112 = vst.msk [vmem:[#allocation6] sm:$0x1] %vm111_vm2, %v110_v7 }
  0xf0   :  { %174 = shalt.err (!%p171_p12)
}
  0xf1   :  { %s175_s2 = scalar_lea.hbm %s246_s3, 16 }
  0xf2   :  { %p176_p13 = scmp.ne.s32.totalorder %s246_s3, %s175_s2  ;;  %p179_p0 = scmp.lt.u32.totalorder %s175_s2, %s246_s3 }
  0xf4   :  { %p181_p1 = pnand %p179_p0, %p176_p13 }
  0xf6   :  { %184 = shalt.err (!%p181_p1)
}
  0xf7   :  { %122 = dma.vmem_to_hbm [thread:$0]  %s120_s28, 16, %s246_s3, [#allocation5]  }
  0xf8   :  { %187 = dma.done.wait [#allocation5], 16  }
  0xf9   :  { %188 = vsyncadd [#allocation5], 4294967280 }
  0xfa   :  { %126 = vsyncpa [#allocation4], 1 }
  0xfb   :  { %127 = vsyncpa [#allocation5], 1 }

</bundles_post_ra>
